<compile_context>
chip_gen: v6e
topology: v6e:2x2x1
jax: 0.10.0
libtpu: 0.0.40
codegen_flags: <defaults>
</compile_context>

<pallas_src>
import functools
import math

import jax
import jax.numpy as jnp
from jax import lax
from jax.experimental import pallas as pl
from jax.experimental.pallas import tpu as pltpu


def _self_attention_kernel(
    x_ref,        # (1, S, F)   input slab for the current batch (resident across query tiles)
    wqkv_ref,     # (F, 3E)     fused, pre-transposed projection weight
    bqkv_ref,     # (1, 3E)     fused bias
    attn_ref,     # (1, TQ, E)  output: attention for this query tile
    w_ref,        # (1, TQ, S)  output: softmax weights for this query tile
    qkv_scratch,  # (S, 3E) f32 fused Q|K|V for the whole batch (computed once per batch)
):
    qi = pl.program_id(1)
    S = x_ref.shape[1]
    TQ = attn_ref.shape[1]
    E = attn_ref.shape[2]

    # One fused MXU matmul per batch: (S, F) @ (F, 3E) -> Q|K|V, f32 accumulate.
    @pl.when(qi == 0)
    def _():
        x = x_ref[0]
        qkv_scratch[...] = (
            jnp.dot(x, wqkv_ref[...], preferred_element_type=jnp.float32)
            + bqkv_ref[0].astype(jnp.float32)
        )

    # Slice this query tile's Q rows and the full K/V from the resident scratch.
    q_start = pl.multiple_of(qi * TQ, TQ)
    q_tile = qkv_scratch[pl.ds(q_start, TQ), :]          # (TQ, 3E)
    q = q_tile[:, 0:E]                                   # (TQ, E)
    kv = qkv_scratch[...]                                # (S, 3E)
    k = kv[:, E:2 * E]                                   # (S, E)
    v = kv[:, 2 * E:3 * E]                               # (S, E)

    # scores = Q @ K^T without an in-kernel transpose (contract last dims).
    scores = lax.dot_general(
        q, k, (((1,), (1,)), ((), ())), preferred_element_type=jnp.float32
    )                                                    # (TQ, S)
    scaled = scores * (1.0 / math.sqrt(S))               # matches K.shape[1] ** 0.5

    # Numerically-stable softmax along the last axis (f32 on the VPU/EUP).
    m = jnp.max(scaled, axis=-1, keepdims=True)
    e = jnp.exp(scaled - m)
    denom = jnp.sum(e, axis=-1, keepdims=True)
    weights = e * pl.reciprocal(denom, approx=True)      # (TQ, S)

    attention = jnp.dot(weights, v, preferred_element_type=jnp.float32)  # (TQ, E)

    attn_ref[0] = attention.astype(attn_ref.dtype)
    w_ref[0] = weights.astype(w_ref.dtype)


def _choose_query_tile(S: int) -> int:
    """Pick a query-tile size: whole S for small problems, 128-512 tiles otherwise."""
    if S <= 1024:
        return S
    for cand in (512, 256, 128):
        if S % cand == 0:
            return cand
    return S


@functools.partial(jax.jit, static_argnames=("use_bf16_matmul",))
def self_attention(x, wq, bq, wk, bk, wv, bv, use_bf16_matmul: bool = False):
    """x: (B, S, F). Weights: PyTorch layout (E, F). Biases: (E,). Returns (attn, weights)."""
    B, S, F = x.shape
    E = wq.shape[0]

    # Fuse the three projections and pre-transpose on the host: (F, 3E), (1, 3E).
    wqkv = jnp.concatenate([wq, wk, wv], axis=0).T
    bqkv = jnp.concatenate([bq, bk, bv], axis=0).reshape(1, 3 * E).astype(jnp.float32)

    if use_bf16_matmul:
        # bf16 MXU operands, f32 accumulation & f32 softmax in the kernel.
        x_in = x.astype(jnp.bfloat16)
        wqkv = wqkv.astype(jnp.bfloat16)
    else:
        x_in = x

    TQ = _choose_query_tile(S)
    nq = S // TQ

    # Explicit scoped-VMEM budget from the actual (double-buffered) block set.
    xb = x_in.dtype.itemsize
    wb = wqkv.dtype.itemsize
    vmem_needed = (
        2 * S * F * xb            # x block
        + 2 * F * 3 * E * wb      # fused weight block
        + 2 * 3 * E * 4           # fused bias block
        + 2 * TQ * E * 4          # attention output block
        + 2 * TQ * S * 4          # softmax-weights output block
        + S * 3 * E * 4           # QKV scratch
    )
    vmem_limit = int(min(max(2 * vmem_needed, 16 * 1024 * 1024), 64 * 1024 * 1024))

    attn, weights = pl.pallas_call(
        _self_attention_kernel,
        out_shape=(
            jax.ShapeDtypeStruct((B, S, E), jnp.float32),
            jax.ShapeDtypeStruct((B, S, S), jnp.float32),
        ),
        grid_spec=pltpu.PrefetchScalarGridSpec(
            num_scalar_prefetch=0,
            grid=(B, nq),
            in_specs=[
                pl.BlockSpec((1, S, F), lambda b, q: (b, 0, 0)),
                pl.BlockSpec((F, 3 * E), lambda b, q: (0, 0)),
                pl.BlockSpec((1, 3 * E), lambda b, q: (0, 0)),
            ],
            out_specs=[
                pl.BlockSpec((1, TQ, E), lambda b, q: (b, q, 0)),
                pl.BlockSpec((1, TQ, S), lambda b, q: (b, q, 0)),
            ],
            scratch_shapes=[pltpu.VMEM((S, 3 * E), jnp.float32)],
        ),
        compiler_params=pltpu.CompilerParams(
            dimension_semantics=("parallel", "arbitrary"),
            vmem_limit_bytes=vmem_limit,
        ),
    )(x_in, wqkv, bqkv)
    return attn, weights


def _reference(x, wq, bq, wk, bk, wv, bv):
    q = jnp.einsum("bsf,ef->bse", x, wq) + bq
    k = jnp.einsum("bsf,ef->bse", x, wk) + bk
    v = jnp.einsum("bsf,ef->bse", x, wv) + bv
    scores = jnp.einsum("bse,bte->bst", q, k)
    scaled = scores / (k.shape[1] ** 0.5)
    weights = jax.nn.softmax(scaled, axis=-1)
    attn = jnp.einsum("bst,bte->bse", weights, v)
    return attn, weights


if __name__ == "__main__":
    B, S, F, E = 2, 8, 32, 32

    key = jax.random.PRNGKey(0)
    kx, kq, kbq, kk, kbk, kv, kbv = jax.random.split(key, 7)

    x = jax.random.normal(kx, (B, S, F), dtype=jnp.float32)

    # Deterministic PyTorch-like init: uniform(-1/sqrt(in_features), +1/sqrt(in_features))
    bound = 1.0 / math.sqrt(F)
    wq = jax.random.uniform(kq, (E, F), minval=-bound, maxval=bound, dtype=jnp.float32)
    bq = jax.random.uniform(kbq, (E,), minval=-bound, maxval=bound, dtype=jnp.float32)
    wk = jax.random.uniform(kk, (E, F), minval=-bound, maxval=bound, dtype=jnp.float32)
    bk = jax.random.uniform(kbk, (E,), minval=-bound, maxval=bound, dtype=jnp.float32)
    wv = jax.random.uniform(kv, (E, F), minval=-bound, maxval=bound, dtype=jnp.float32)
    bv = jax.random.uniform(kbv, (E,), minval=-bound, maxval=bound, dtype=jnp.float32)

    attn, weights = self_attention(x, wq, bq, wk, bk, wv, bv)
    jax.block_until_ready((attn, weights))

    # Sanity check against a pure-JAX reference of the PyTorch forward pass.
    # Tolerance is relaxed to cover the EUP approximate reciprocal in the softmax.
    ref_attn, ref_w = _reference(x, wq, bq, wk, bk, wv, bv)
    assert jnp.allclose(attn, ref_attn, atol=2e-3, rtol=2e-3)
    assert jnp.allclose(weights, ref_w, atol=2e-3, rtol=2e-3)

    print("KERNEL_OK")
</pallas_src>

<mosaic_0001>
module attributes {stable_mosaic.version = 11 : i64} {
  func.func @_self_attention_kernel(%arg0: i32, %arg1: i32, %arg2: memref<1x8x32xf32, #tpu.memory_space<vmem>>, %arg3: memref<32x96xf32, #tpu.memory_space<vmem>>, %arg4: memref<1x96xf32, #tpu.memory_space<vmem>>, %arg5: memref<1x8x32xf32, #tpu.memory_space<vmem>>, %arg6: memref<1x8x8xf32, #tpu.memory_space<vmem>>, %arg7: memref<8x96xf32, #tpu.memory_space<vmem>>) attributes {dimension_semantics = [#tpu.dimension_semantics<parallel>, #tpu.dimension_semantics<arbitrary>], iteration_bounds = array<i64: 2, 1>, scalar_prefetch = 0 : i64, scratch_operands = 1 : i64, tpu.core_type = #tpu.core_type<tc>, window_params = [{transform_indices = @transform_0, window_bounds = array<i64: 1, 8, 32>}, {pipeline_mode = #tpu.pipeline_mode<synchronous>, transform_indices = @transform_1, window_bounds = array<i64: 32, 96>}, {pipeline_mode = #tpu.pipeline_mode<synchronous>, transform_indices = @transform_2, window_bounds = array<i64: 1, 96>}, {transform_indices = @transform_3, window_bounds = array<i64: 1, 8, 32>}, {transform_indices = @transform_4, window_bounds = array<i64: 1, 8, 8>}]} {
    %c0_i32 = arith.constant 0 : i32
    %0 = arith.cmpi eq, %arg1, %c0_i32 : i32
    %1 = arith.extui %0 : i1 to i32
    %c0_i32_0 = arith.constant 0 : i32
    %2 = arith.cmpi ne, %1, %c0_i32_0 : i32
    scf.if %2 {
      %c0_13 = arith.constant 0 : index
      %c0_14 = arith.constant 0 : index
      %c0_15 = arith.constant 0 : index
      %31 = vector.load %arg2[%c0_13, %c0_14, %c0_15] : memref<1x8x32xf32, #tpu.memory_space<vmem>>, vector<1x8x32xf32>
      %32 = vector.shape_cast %31 : vector<1x8x32xf32> to vector<8x32xf32>
      %c0_16 = arith.constant 0 : index
      %c0_17 = arith.constant 0 : index
      %33 = vector.load %arg3[%c0_16, %c0_17] : memref<32x96xf32, #tpu.memory_space<vmem>>, vector<32x96xf32>
      %cst_18 = arith.constant dense<0.000000e+00> : vector<8x96xf32>
      %34 = tpu.matmul %32, %33, %cst_18 {dimension_numbers = #tpu.dot_dimension_numbers<[1], [0], [0], [1], [0, 0, 1, 1], [], []>} : vector<8x32xf32>, vector<32x96xf32>, vector<8x96xf32> -> vector<8x96xf32>
      %c0_19 = arith.constant 0 : index
      %c0_20 = arith.constant 0 : index
      %35 = vector.load %arg4[%c0_19, %c0_20] : memref<1x96xf32, #tpu.memory_space<vmem>>, vector<1x96xf32>
      %36 = vector.shape_cast %35 : vector<1x96xf32> to vector<96xf32>
      %37 = vector.shape_cast %36 : vector<96xf32> to vector<1x96xf32>
      %38 = vector.broadcast %37 : vector<1x96xf32> to vector<8x96xf32>
      %39 = arith.addf %34, %38 : vector<8x96xf32>
      %c0_21 = arith.constant 0 : index
      %c0_22 = arith.constant 0 : index
      %40 = vector.load %arg7[%c0_21, %c0_22] : memref<8x96xf32, #tpu.memory_space<vmem>>, vector<8x96xf32>
      tpu.vector_store %arg7[%c0_21, %c0_22], %39 {strides = array<i32>} : memref<8x96xf32, #tpu.memory_space<vmem>>, vector<8x96xf32>,
    } else {
    }
    %c8_i32 = arith.constant 8 : i32
    %3 = arith.muli %arg1, %c8_i32 : i32
    %4 = tpu.assume_multiple %3, 8 : i32
    %5 = arith.index_cast %4 : i32 to index
    %c0 = arith.constant 0 : index
    %6 = vector.load %arg7[%5, %c0] : memref<8x96xf32, #tpu.memory_space<vmem>>, vector<8x96xf32>
    %7 = vector.extract_strided_slice %6 {offsets = [0, 0], sizes = [8, 32], strides = [1, 1]} : vector<8x96xf32> to vector<8x32xf32>
    %c0_1 = arith.constant 0 : index
    %c0_2 = arith.constant 0 : index
    %8 = vector.load %arg7[%c0_1, %c0_2] : memref<8x96xf32, #tpu.memory_space<vmem>>, vector<8x96xf32>
    %9 = vector.extract_strided_slice %8 {offsets = [0, 32], sizes = [8, 32], strides = [1, 1]} : vector<8x96xf32> to vector<8x32xf32>
    %10 = vector.extract_strided_slice %8 {offsets = [0, 64], sizes = [8, 32], strides = [1, 1]} : vector<8x96xf32> to vector<8x32xf32>
    %cst = arith.constant dense<0.000000e+00> : vector<8x8xf32>
    %11 = tpu.matmul %7, %9, %cst {dimension_numbers = #tpu.dot_dimension_numbers<[1], [1], [0], [0], [0, 0, 1, 0], [], []>} : vector<8x32xf32>, vector<8x32xf32>, vector<8x8xf32> -> vector<8x8xf32>
    %cst_3 = arith.constant 0.353553385 : f32
    %12 = vector.broadcast %cst_3 : f32 to vector<8x8xf32>
    %13 = arith.mulf %11, %12 : vector<8x8xf32>
    %cst_4 = arith.constant dense<0xFF800000> : vector<8xf32>
    %14 = vector.multi_reduction <maximumf>, %13, %cst_4 [1] : vector<8x8xf32> to vector<8xf32>
    %15 = vector.shape_cast %14 : vector<8xf32> to vector<8x1xf32>
    %16 = vector.broadcast %15 : vector<8x1xf32> to vector<8x8xf32>
    %17 = arith.subf %13, %16 : vector<8x8xf32>
    %18 = math.exp %17 : vector<8x8xf32>
    %cst_5 = arith.constant dense<0.000000e+00> : vector<8xf32>
    %19 = vector.multi_reduction <add>, %18, %cst_5 [1] : vector<8x8xf32> to vector<8xf32>
    %20 = vector.shape_cast %19 : vector<8xf32> to vector<8x1xf32>
    %21 = tpu.reciprocal %20 {approx = true} : vector<8x1xf32> -> vector<8x1xf32>
    %22 = vector.broadcast %21 : vector<8x1xf32> to vector<8x8xf32>
    %23 = arith.mulf %18, %22 : vector<8x8xf32>
    %cst_6 = arith.constant dense<0.000000e+00> : vector<8x32xf32>
    %24 = tpu.matmul %23, %10, %cst_6 {dimension_numbers = #tpu.dot_dimension_numbers<[1], [0], [0], [1], [0, 0, 1, 1], [], []>} : vector<8x8xf32>, vector<8x32xf32>, vector<8x32xf32> -> vector<8x32xf32>
    %c0_7 = arith.constant 0 : index
    %c0_8 = arith.constant 0 : index
    %c0_9 = arith.constant 0 : index
    %25 = vector.load %arg5[%c0_7, %c0_8, %c0_9] : memref<1x8x32xf32, #tpu.memory_space<vmem>>, vector<1x8x32xf32>
    %26 = vector.shape_cast %25 : vector<1x8x32xf32> to vector<8x32xf32>
    %27 = vector.shape_cast %24 : vector<8x32xf32> to vector<1x8x32xf32>
    tpu.vector_store %arg5[%c0_7, %c0_8, %c0_9], %27 {strides = array<i32>} : memref<1x8x32xf32, #tpu.memory_space<vmem>>, vector<1x8x32xf32>,
    %c0_10 = arith.constant 0 : index
    %c0_11 = arith.constant 0 : index
    %c0_12 = arith.constant 0 : index
    %28 = vector.load %arg6[%c0_10, %c0_11, %c0_12] : memref<1x8x8xf32, #tpu.memory_space<vmem>>, vector<1x8x8xf32>
    %29 = vector.shape_cast %28 : vector<1x8x8xf32> to vector<8x8xf32>
    %30 = vector.shape_cast %23 : vector<8x8xf32> to vector<1x8x8xf32>
    tpu.vector_store %arg6[%c0_10, %c0_11, %c0_12], %30 {strides = array<i32>} : memref<1x8x8xf32, #tpu.memory_space<vmem>>, vector<1x8x8xf32>,
    return
  }
  func.func @transform_0(%arg0: i32, %arg1: i32) -> (i32, i32, i32) {
    %c0_i32 = arith.constant 0 : i32
    %c0_i32_0 = arith.constant 0 : i32
    %c0_i32_1 = arith.constant 0 : i32
    return %arg0, %c0_i32, %c0_i32_0 : i32, i32, i32
  }
  func.func @transform_1(%arg0: i32, %arg1: i32) -> (i32, i32) {
    %c0_i32 = arith.constant 0 : i32
    %c0_i32_0 = arith.constant 0 : i32
    %c0_i32_1 = arith.constant 0 : i32
    return %c0_i32, %c0_i32_0 : i32, i32
  }
  func.func @transform_2(%arg0: i32, %arg1: i32) -> (i32, i32) {
    %c0_i32 = arith.constant 0 : i32
    %c0_i32_0 = arith.constant 0 : i32
    %c0_i32_1 = arith.constant 0 : i32
    return %c0_i32, %c0_i32_0 : i32, i32
  }
  func.func @transform_3(%arg0: i32, %arg1: i32) -> (i32, i32, i32) {
    %c0_i32 = arith.constant 0 : i32
    %c0_i32_0 = arith.constant 0 : i32
    return %arg0, %arg1, %c0_i32 : i32, i32, i32
  }
  func.func @transform_4(%arg0: i32, %arg1: i32) -> (i32, i32, i32) {
    %c0_i32 = arith.constant 0 : i32
    %c0_i32_0 = arith.constant 0 : i32
    return %arg0, %arg1, %c0_i32 : i32, i32, i32
  }
}

</mosaic_0001>

<bundles_post_ra>
// kernel: self_attention.1
= control target key start
LH: loop header
LB: loop body
LE: loop exit
PB: predicated region body
PF: predicated region fallthrough
CT: control target
= control target key end

     0   :  { %10 = vsyncpa [#allocation4], 0  ;;  %s1044_s0 = inlined_call_operand.vmem [shape: f32[2,8,32], index: 0, kind: input, shape index: {}]   ;;  %s1045_s1 = inlined_call_operand.vmem [shape: f32[32,96], index: 1, kind: input, shape index: {}]   ;;  %s1046_s2 = inlined_call_operand.vmem [shape: f32[1,96], index: 2, kind: input, shape index: {}]   ;;  %s1047_s3 = inlined_call_operand.hbm [shape: f32[2,8,32], index: 3, kind: output, shape index: {0}]   ;;  %s1048_s4 = inlined_call_operand.hbm [shape: f32[2,8,8], index: 4, kind: output, shape index: {1}]  }
   0x1   :  { %12 = vsyncpa [#allocation4 + $0x1], 0 }
   0x2   :  { %13 = vsyncpa [#allocation6], 0 }
   0x3   :  { %15 = vsyncpa [#allocation6 + $0x1], 0  ;;  %s879_s15 = smov 0   ;;  %s881_s16 = smov 0  }
   0x4   :  { %s883_s17 = smov 0   ;;  %s885_s18 = smov 0  }
   0x5   :  { %s887_s19 = smov 0   ;;  %s889_s20 = smov 0  }
   0x6 LB: > { %s623_s21 = sadd.s32 4294967295, %s846_s20   ;;  %s624_s22 = sadd.s32 4294967294, %s846_s20   ;;  %s846_s20 = sphi %s889_s20, %s21_s20   ;;  %s842_s19 = sphi %s887_s19, %s1055_s19   ;;  %s838_s18 = sphi %s885_s18, %s1054_s18   ;;  %s834_s17 = sphi %s883_s17, %s1053_s17   ;;  %s830_s16 = sphi %s881_s16, %s1052_s16   ;;  %s826_s15 = sphi %s879_s15, %s1051_s15  }
   0x7   : > { %s33_s23 = sadd.s32 1, %s842_s19  ;;  %s110_s24 = sadd.s32 1, %s834_s17 }
   0x8   : > { %p35_p0 = scmp.ge.s32.totalorder %s33_s23, 2  ;;  %p120_p1 = scmp.ne.s32.totalorder %s834_s17, %s830_s16 }
   0x9   : > { %p121_p2 = scmp.eq.s32.totalorder %s623_s21, 1  ;;  %p126_p3 = scmp.ne.s32.totalorder %s830_s16, %s826_s15 }
   0xa   : > { %s1057_s23 = smov (%p35_p0, %s33_s23), 0  ;;  %p127_p5 = scmp.eq.s32.totalorder %s624_s22, 1 }
   0xb   : > { %p919_p4 = por %p121_p2, %p120_p1  ;;  %s105_s26 = ssub.s32 %s842_s19, %s1057_s23 }
   0xc   : > { %p627_p6 = scmp.ge.s32.totalorder %s846_s20, 1  ;;  %p108_p7 = scmp.eq.s32.totalorder %s105_s26, 0 }
   0xd   : > { %p926_p8 = por %p127_p5, %p126_p3  ;;  %p186_p9 = scmp.lt.s32.totalorder %s846_s20, 3 }
   0xe   : > { %s932_s28 = scalar_select %p108_p7, %s834_s17, %s110_s24  }
   0xf   : > { %p187_p10 = pnand %p627_p6, %p186_p9 }
  0x10   : > { %p216_p11 = scmp.lt.s32.totalorder (!%p187_p10), %s838_s18, 1  ;;  %s850_s26 = smov (!%p187_p10), 96  }
  0x11   : > { %190 = sbr.rel (%p187_p10) target bundleno = 1066 (0x42a), region = 32  ;;  %s851_s29 = smov (!%p187_p10), 64  }
  0x12   : > { %s963_s30 = sand.u32 (!%p187_p10), 1, %s830_s16   ;;  %s852_s14 = smov (!%p187_p10), [#allocation5]  }
  0x13   : > { %s628_s5 = sshll.u32 (!%p187_p10), %s963_s30, 3  ;;  %s492_s12 = scalar_lea.sflag (!%p187_p10), [#allocation6], %s963_s30 }
  0x14   : > { %s215_s6 = scalar_lea.vmem (!%p187_p10), [#allocation5], %s628_s5 }
  0x15   : > { %s520_s11 = sshll.u32 (!%p187_p10), %s215_s6, 4  ;;  %s521_s11 = int_to_ptr.vmem [resolvable:$true] %s520_s11 }
  0x16   : > { %v228_v0 = vld [vmem:[%s1045_s1 + $0x18] sm:$0xff]  ;;  %v848_v1 = vmov 0.0   ;;  %v227_v2 = vld [vmem:[%s1045_s1 + $0x10] sm:$0xff]  ;;  %vm849_vm0 = vmmov 0   ;;  %s217_s7 = scalar_select %p216_p11, %s838_s18, 1  ;;  %v226_v3 = vld [vmem:[%s1045_s1 + $0x8] sm:$0xff] }
  0x17   : > { %651 = vmatprep.subr.mxu0 %v848_v1  ;;  %659 = vmatprep.mubr.msk.f32.mxu0 %vm849_vm0, %v848_v1  ;;  %v225_v4 = vld [vmem:[%s1045_s1] sm:$0xff]  ;;  %vm236_vm1 = vcmask 261120   ;;  %vm310_vm2 = vcmask 785408   ;;  %vm396_vm3 = vcmask 64512   ;;  %s740_s13 = scalar_lea.vmem %s521_s11, 128 }
  0x18   : > { %652 = vmatpush3.msra.mxu0 %v228_v0  ;;  %662 = vmatprep.subr.mxu1 %v848_v1  ;;  %s630_s10 = sshll.u32 %s217_s7, 3  ;;  %v631_v6 = vld [vmem:[%s1046_s2] ss:$0 sm:$0xff]  ;;  %s638_s7 = sshll.u32 %s838_s18, 7 }
  0x19   : > { %653 = vmatprep.subr.mxu0 %v848_v1  ;;  %664 = vmatprep.mubr.msk.f32.mxu1 %vm849_vm0, %v848_v1  ;;  %s219_s21 = scalar_lea.vmem %s1044_s0, %s630_s10  ;;  %s518_s10 = scalar_lea.hbm %s1048_s4, %s638_s7 }
  0x1a   : > { %654 = vmatpush3.msra.mxu0 %v227_v2  ;;  %v224_v5 = vld [vmem:[%s219_s21] sm:$0xff]  ;;  %p741_p12 = scmp.ne.s32.totalorder %s521_s11, %s740_s13  ;;  %s744_s21 = sshll.u32 %s852_s14, 4  ;;  %s745_s21 = int_to_ptr.vmem [resolvable:$false] %s744_s21 }
  0x1b   : > { %655 = vmatprep.subr.mxu0 %v848_v1  ;;  %s746_s22 = scalar_lea.vmem %s745_s21, 256  ;;  %p747_p1 = scmp.lt.s32.totalorder %s521_s11, %s745_s21 }
  0x1c   : > { %656 = vmatpush3.msra.mxu0 %v226_v3  ;;  %p742_p13 = pnand %p741_p12, %p919_p4  ;;  %p748_p2 = scmp.lt.s32.totalorder %s746_s22, %s740_s13 }
  0x1d   : > { %657 = vmatprep.subr.mxu0 %v848_v1 }
  0x1e   : > { %658 = vmatpush3.msra.mxu0 %v225_v4  ;;  %p743_p0 = pneg %p742_p13  ;;  %p749_p3 = por %p748_p2, %p747_p1 }
  0x1f   : > { %660 = vmatmul.mubr.msk.f32.vlgmr.msra.gmra.mxu0 %vm236_vm1, %v224_v5 }
  0x20   : > { %p750_p5 = pnand %p749_p3, %p743_p0 }
  0xdf   : > { %v306_v7 = vpop.f32.mrf.mxu0 }
  0xe0   : > { %v307_v8 = vadd.f32 %v631_v6, %v306_v7 }
  0xe1   : > { %v661_v9 = vpop.f32.mrf.mxu0 }
  0xe2   : > { %311 = vst.msk [vmem:[#allocation2] sm:$0xff] %vm310_vm2, %v307_v8 }
  0xe9   : > { %v315_v10 = vld [vmem:[#allocation2] sm:$0xff] }
  0xea   : > { %317 = vrot.lane.b32.xlu0 %v315_v10, %s850_s26 }
 0x15c   : > { %v318_v11 = vpop.permute.xlu0 %317 }
 0x15d   : > { %663 = vmatpush3.xpose.msk.msra.mxu1 %vm236_vm1, %v318_v11 }
 0x15e   : > { %667 = vmatprep.subr.mxu1 %v848_v1 }
 0x160   : > { %665 = vmatmul.mubr.msk.f32.vlgmr.msra.gmra.mxu1 %vm236_vm1, %v315_v10 }
 0x161   : > { %669 = vmatprep.mubr.msk.f32.mxu1 %vm849_vm0, %v848_v1 }
 0x220   : > { %v391_v12 = vpop.f32.mrf.mxu1 }
 0x221   : > { %v395_v13 = vmul.f32 0.35355338, %v391_v12 }
 0x222   : > { %v666_v14 = vpop.f32.mrf.mxu1 }
 0x223   : > { %v397_v15 = vsel %vm396_vm3, %v395_v13, -inf }
 0x224   : > { %398 = vmax.xlane.f32.xlu0 %v397_v15 }
 0x2ad   : > { %v399_v16 = vpop.xlane.xlu0 %398 }
 0x2ae   : > { %v400_v17 = vsub.f32 %v395_v13, %v399_v16 }
 0x2b0   : > { %v401_v18 = vmul.f32 1.442695, %v400_v17 }
 0x2b2   : > { %736 = vpow2.f32 %v401_v18 }
 0x2bf   : > { %v737_v19 = vpop.eup %736 }
 0x2c0   : > { %v403_v20 = vsel %vm396_vm3, %v737_v19, 0.0 }
 0x2c1   : > { %404 = vadd.xlane.f32.xlu1 %v403_v20 }
 0x2d2   : > { %408 = vrot.lane.b32.xlu1 %v315_v10, %s851_s29 }
 0x34a   : > { %v405_v21 = vpop.xlane.xlu1 %404 }
 0x34b   : > { %738 = vrcp.f32 %v405_v21 }
 0x34e   : > { %v409_v22 = vpop.permute.xlu1 %408 }
 0x34f   : > { %668 = vmatpush3.msra.mxu1 %v409_v22 }
 0x358   : > { %v739_v23 = vpop.eup %738 }
 0x359   : > { %v407_v24 = vmul.f32 %v739_v23, %v737_v19 }
 0x35b   : > { %670 = vmatmul.mubr.msk.f32.vlgmr.msra.gmra.mxu1 %vm396_vm3, %v407_v24  ;;  %485 = vst.msk [vmem:[%s215_s6] sm:$0xff] %vm396_vm3, %v407_v24 }
 0x35c   : > { %753 = shalt.err (!%p750_p5)
}
 0x35d   : > { %s754_s24 = scalar_lea.hbm %s518_s10, 128  ;;  %s758_s6 = scalar_lea.hbm %s1048_s4, 256 }
 0x35e   : > { %p755_p6 = scmp.ne.s32.totalorder %s518_s10, %s754_s24  ;;  %p759_p10 = scmp.lt.s32.totalorder %s518_s10, %s1048_s4 }
 0x35f   : > { %p760_p11 = scmp.lt.s32.totalorder %s758_s6, %s754_s24 }
 0x360   : > { %p756_p7 = pnand %p755_p6, %p919_p4 }
 0x361   : > { %p761_p12 = por %p760_p11, %p759_p10 }
 0x362   : > { %p757_p9 = pneg %p756_p7 }
 0x364   : > { %p762_p13 = pnand %p761_p12, %p757_p9 }
 0x366   : > { %765 = shalt.err (!%p762_p13)
}
 0x367   : > { %673 = dma.vmem_to_hbm [thread:$0]  (%p919_p4), %s521_s11, 128, %s518_s10, %s492_s12  }
 0x368   : > { %s208_s13 = scalar_lea.vmem [#allocation3], %s628_s5  ;;  %s996_s26 = scalar_lea.hbm %s1047_s3, %s638_s7 }
 0x369   : > { %s506_s14 = sshll.u32 %s208_s13, 4  ;;  %s487_s24 = scalar_lea.sflag [#allocation4], %s963_s30  ;;  %s998_s14 = int_to_ptr.vmem [resolvable:$true] %s506_s14 }
 0x36a   : > { %s766_s10 = scalar_lea.vmem %s998_s14, 128  ;;  %s853_s18 = smov [#allocation3]  }
 0x36b   : > { %p767_p0 = scmp.ne.s32.totalorder %s998_s14, %s766_s10  ;;  %s770_s5 = sshll.u32 %s853_s18, 4  ;;  %s771_s5 = int_to_ptr.vmem [resolvable:$false] %s770_s5 }
 0x36c   : > { %s772_s7 = scalar_lea.vmem %s771_s5, 256  ;;  %p773_p3 = scmp.lt.s32.totalorder %s998_s14, %s771_s5 }
 0x36d   : > { %p768_p1 = pnand %p767_p0, %p919_p4  ;;  %p774_p5 = scmp.lt.s32.totalorder %s772_s7, %s766_s10 }
 0x36f   : > { %p769_p2 = pneg %p768_p1  ;;  %p775_p6 = por %p774_p5, %p773_p3 }
 0x371   : > { %p776_p7 = pnand %p775_p6, %p769_p2 }
 0x41b   : > { %v480_v25 = vpop.f32.mrf.mxu1 }
 0x41c   : > { %484 = vst.msk [vmem:[%s208_s13] sm:$0xff] %vm236_vm1, %v480_v25 }
 0x41d   : > { %v671_v26 = vpop.f32.mrf.mxu1 }
 0x41e   : > { %779 = shalt.err (!%p776_p7)
}
 0x41f   : > { %s780_s11 = scalar_lea.hbm %s996_s26, 128  ;;  %s784_s29 = scalar_lea.hbm %s1047_s3, 256 }
 0x420   : > { %p781_p9 = scmp.ne.s32.totalorder %s996_s26, %s780_s11  ;;  %p785_p12 = scmp.lt.s32.totalorder %s996_s26, %s1047_s3 }
 0x421   : > { %p786_p13 = scmp.lt.s32.totalorder %s784_s29, %s780_s11 }
 0x422   : > { %p782_p10 = pnand %p781_p9, %p919_p4 }
 0x423   : > { %p787_p0 = por %p786_p13, %p785_p12 }
 0x424   : > { %p783_p11 = pneg %p782_p10 }
 0x426   : > { %p788_p1 = pnand %p787_p0, %p783_p11 }
 0x428   : > { %791 = shalt.err (!%p788_p1)
}
 0x429   : > { %672 = dma.vmem_to_hbm [thread:$0]  (%p919_p4), %s998_s14, 128, %s996_s26, %s487_s24  }
 0x42a PF: > { %p683_p2 = scmp.ge.s32.totalorder %s846_s20, 2  ;;  %s532_s9 = sand.u32 1, %s826_s15  }
 0x42b   : > { %s533_s13 = scalar_lea.sflag [#allocation4], %s532_s9 }
 0x42c   : > { %p677_p3 = pnand %p683_p2, %p926_p8 }
 0x42e   : > { %p678_p5 = pneg %p677_p3 }
 0x430   : > { %817 = dma.done.wait (%p678_p5), %s533_s13, 128  }
 0x431   : > { %819 = vsyncadd (%p678_p5), %s533_s13, 4294967168  ;;  %s542_s21 = scalar_lea.sflag [#allocation6], %s532_s9 }
 0x432   : > { %821 = dma.done.wait (%p678_p5), %s542_s21, 128  }
 0x433   : > { %823 = vsyncadd (%p678_p5), %s542_s21, 4294967168  ;;  %s21_s20 = sadd.s32 1, %s846_s20   ;;  %s1051_s15 = smov %s830_s16 }
 0x434   : > { %p18_p6 = scmp.ge.s32.totalorder %s21_s20, 4   ;;  %s1052_s16 = smov %s834_s17 }
 0x435   : > { %s1053_s17 = smov %s932_s28  ;;  %s1054_s18 = smov %s842_s19 }
 0x436   : > { %s1055_s19 = smov %s1057_s23  ;;  %20 = sbr.rel (!%p18_p6) target bundleno = 6 (0x6), region = 89 }
 0x43b   :  { %547 = vsyncpa [#allocation4], 1 }
 0x43c   :  { %549 = vsyncpa [#allocation4 + $0x1], 1 }
 0x43d   :  { %550 = vsyncpa [#allocation6], 1 }
 0x43e   :  { %552 = vsyncpa [#allocation6 + $0x1], 1 }

</bundles_post_ra>
